<compile_context>
chip_gen: v7x
topology: tpu7x:2x2x1
jax: 0.10.0
libtpu: 0.0.40
codegen_flags: <defaults>
</compile_context>

<pallas_src>
import jax
import jax.numpy as jnp
from jax import lax
from jax.experimental import pallas as pl
from jax.experimental.pallas import tpu as pltpu

# ---------------- config (small, consistent with SiglipVisionConfig) ----------------
NUM_CHANNELS = 3
IMAGE_SIZE = 16
PATCH_SIZE = 4
HIDDEN = 32
NUM_PATCHES = (IMAGE_SIZE // PATCH_SIZE) ** 2          # 16
CPP = NUM_CHANNELS * PATCH_SIZE * PATCH_SIZE           # 48


# ---------------- the fused kernel (B_BLK images per grid step) ----------------
def siglip_embed_kernel(patches_ref, wp_ref, bp_ref, pos_ref, out_ref):
    """patches_ref: (B_BLK, N, CPP)   extracted patches
       wp_ref:      (CPP, HIDDEN)     Conv2d weight as a matmul weight
       bp_ref:      (1, HIDDEN)       Conv2d bias
       pos_ref:     (N, HIDDEN)       position-embedding table (ids == arange(N))
       out_ref:     (B_BLK, N, HIDDEN)
    """
    bblk = patches_ref.shape[0]
    # Fold the batch into the matmul M dimension: (B_BLK*N, CPP) rows fill the
    # MXU far better than per-image 16-row pushes (perf feedback #1).
    x = patches_ref[...].reshape(bblk * NUM_PATCHES, CPP)
    y = jnp.dot(x, wp_ref[...], preferred_element_type=jnp.float32) + bp_ref[...]
    # Position embeddings broadcast over the folded batch (leading/major dim).
    out_ref[...] = y.reshape(bblk, NUM_PATCHES, HIDDEN) + pos_ref[...]


def _choose_batch_block(batch):
    # Largest divisor of `batch` that still leaves >= 2 grid steps, so the
    # "parallel" grid axis can be split across v7x's two TensorCores while the
    # blocks stay as fat as possible.  On single-TC chips (v5e/v6e) the one
    # extra grid step costs ~0.35 us, which is noise.
    if batch >= 2:
        for cand in range((batch + 1) // 2, 0, -1):
            if batch % cand == 0:
                return cand
    return batch


# ---------------- glue: patch extraction (Conv2d with stride == kernel size) ----------------
def extract_patches(pixel_values):
    # NCHW -> (B, N_patches, C*P*P); per-patch flattening order is (c, kh, kw)
    # to match Conv2d's weight flattening, and patch order is row-major over
    # (H/P, W/P) to match `patch_embeds.flatten(2).permute(0, 2, 1)`.
    B, C, H, W = pixel_values.shape
    P = PATCH_SIZE
    x = pixel_values.reshape(B, C, H // P, P, W // P, P)
    x = x.transpose(0, 2, 4, 1, 3, 5)                  # (B, H/P, W/P, C, P, P)
    return x.reshape(B, (H // P) * (W // P), C * P * P)


# ---------------- wrapper: one pallas_call for the whole forward ----------------
def siglip_vision_embeddings_forward(pixel_values, kp):
    patches = extract_patches(pixel_values)            # (B, N, CPP)
    B = patches.shape[0]
    b_blk = _choose_batch_block(B)

    def full_spec(a):
        return pl.BlockSpec(a.shape, lambda i, n=a.ndim: (0,) * n)

    return pl.pallas_call(
        siglip_embed_kernel,
        out_shape=jax.ShapeDtypeStruct((B, NUM_PATCHES, HIDDEN), jnp.float32),
        grid=(B // b_blk,),
        in_specs=[pl.BlockSpec((b_blk, NUM_PATCHES, CPP), lambda i: (i, 0, 0)),
                  full_spec(kp["wp"]), full_spec(kp["bp"]), full_spec(kp["pos"])],
        out_specs=pl.BlockSpec((b_blk, NUM_PATCHES, HIDDEN), lambda i: (i, 0, 0)),
        compiler_params=pltpu.CompilerParams(dimension_semantics=("parallel",)),
    )(patches, kp["wp"], kp["bp"], kp["pos"])


# ---------------- parameter init (deterministic, PyTorch-native layouts) ----------------
def init_params(key):
    k1, k2, k3 = jax.random.split(key, 3)
    s = 0.02
    return {
        "patch_w": jax.random.normal(
            k1, (HIDDEN, NUM_CHANNELS, PATCH_SIZE, PATCH_SIZE), jnp.float32) * s,
        "patch_b": jax.random.normal(k2, (HIDDEN,), jnp.float32) * s,
        "pos_emb": jax.random.normal(k3, (NUM_PATCHES, HIDDEN), jnp.float32) * s,
    }


# ---------------- one-time weight prep: transpose / reshape (never per call) --------------
def prepare_params(p):
    return {
        "wp":  p["patch_w"].reshape(HIDDEN, CPP).T,    # Conv2d (E,C,P,P) -> (CPP, E)
        "bp":  p["patch_b"].reshape(1, HIDDEN),
        "pos": p["pos_emb"],                           # (N, E); position_ids == arange(N)
    }


# ---------------- pure-JAX reference (mirrors the PyTorch module exactly) -----------------
def reference_forward(pixel_values, p):
    out = lax.conv_general_dilated(
        pixel_values, p["patch_w"],
        window_strides=(PATCH_SIZE, PATCH_SIZE), padding="VALID",
        dimension_numbers=("NCHW", "OIHW", "NCHW"),
        precision=lax.Precision.HIGHEST)
    out = out + p["patch_b"][None, :, None, None]
    B = out.shape[0]
    out = out.reshape(B, HIDDEN, NUM_PATCHES).transpose(0, 2, 1)   # flatten(2).permute(0,2,1)
    return out + p["pos_emb"][None]


if __name__ == "__main__":
    key = jax.random.PRNGKey(0)
    kparams, kx = jax.random.split(key)
    params = init_params(kparams)
    kernel_params = prepare_params(params)             # one-time weight prep
    pixel_values = jax.random.normal(
        kx, (8, NUM_CHANNELS, IMAGE_SIZE, IMAGE_SIZE), jnp.float32)

    fwd = jax.jit(siglip_vision_embeddings_forward)
    out = jax.block_until_ready(fwd(pixel_values, kernel_params))

    assert out.shape == (8, NUM_PATCHES, HIDDEN)
    assert bool(jnp.all(jnp.isfinite(out)))
    ref = reference_forward(pixel_values, params)
    assert bool(jnp.allclose(out, ref, rtol=1e-3, atol=1e-3))
    print("KERNEL_OK")
</pallas_src>

<mosaic_0001>
module attributes {stable_mosaic.version = 11 : i64} {
  func.func @siglip_embed_kernel(%arg0: i32, %arg1: memref<4x16x48xf32, #tpu.memory_space<vmem>>, %arg2: memref<48x32xf32, #tpu.memory_space<vmem>>, %arg3: memref<1x32xf32, #tpu.memory_space<vmem>>, %arg4: memref<16x32xf32, #tpu.memory_space<vmem>>, %arg5: memref<4x16x32xf32, #tpu.memory_space<vmem>>) attributes {dimension_semantics = [#tpu.dimension_semantics<parallel>], iteration_bounds = array<i64: 2>, scalar_prefetch = 0 : i64, scratch_operands = 0 : i64, tpu.core_type = #tpu.core_type<tc>, window_params = [{transform_indices = @transform_0, window_bounds = array<i64: 4, 16, 48>}, {pipeline_mode = #tpu.pipeline_mode<synchronous>, transform_indices = @transform_1, window_bounds = array<i64: 48, 32>}, {pipeline_mode = #tpu.pipeline_mode<synchronous>, transform_indices = @transform_2, window_bounds = array<i64: 1, 32>}, {pipeline_mode = #tpu.pipeline_mode<synchronous>, transform_indices = @transform_3, window_bounds = array<i64: 16, 32>}, {transform_indices = @transform_4, window_bounds = array<i64: 4, 16, 32>}]} {
    %c0 = arith.constant 0 : index
    %c0_0 = arith.constant 0 : index
    %c0_1 = arith.constant 0 : index
    %0 = vector.load %arg1[%c0, %c0_0, %c0_1] : memref<4x16x48xf32, #tpu.memory_space<vmem>>, vector<4x16x48xf32>
    %1 = vector.shape_cast %0 : vector<4x16x48xf32> to vector<64x48xf32>
    %c0_2 = arith.constant 0 : index
    %c0_3 = arith.constant 0 : index
    %2 = vector.load %arg2[%c0_2, %c0_3] : memref<48x32xf32, #tpu.memory_space<vmem>>, vector<48x32xf32>
    %cst = arith.constant dense<0.000000e+00> : vector<64x32xf32>
    %3 = tpu.matmul %1, %2, %cst {dimension_numbers = #tpu.dot_dimension_numbers<[1], [0], [0], [1], [0, 0, 1, 1], [], []>} : vector<64x48xf32>, vector<48x32xf32>, vector<64x32xf32> -> vector<64x32xf32>
    %c0_4 = arith.constant 0 : index
    %c0_5 = arith.constant 0 : index
    %4 = vector.load %arg3[%c0_4, %c0_5] : memref<1x32xf32, #tpu.memory_space<vmem>>, vector<1x32xf32>
    %5 = vector.broadcast %4 : vector<1x32xf32> to vector<64x32xf32>
    %6 = arith.addf %3, %5 : vector<64x32xf32>
    %7 = vector.shape_cast %6 : vector<64x32xf32> to vector<4x16x32xf32>
    %c0_6 = arith.constant 0 : index
    %c0_7 = arith.constant 0 : index
    %8 = vector.load %arg4[%c0_6, %c0_7] : memref<16x32xf32, #tpu.memory_space<vmem>>, vector<16x32xf32>
    %9 = vector.shape_cast %8 : vector<16x32xf32> to vector<1x16x32xf32>
    %10 = vector.broadcast %9 : vector<1x16x32xf32> to vector<4x16x32xf32>
    %11 = arith.addf %7, %10 : vector<4x16x32xf32>
    %c0_8 = arith.constant 0 : index
    %c0_9 = arith.constant 0 : index
    %c0_10 = arith.constant 0 : index
    %12 = vector.load %arg5[%c0_8, %c0_9, %c0_10] : memref<4x16x32xf32, #tpu.memory_space<vmem>>, vector<4x16x32xf32>
    tpu.vector_store %arg5[%c0_8, %c0_9, %c0_10], %11 {strides = array<i32>} : memref<4x16x32xf32, #tpu.memory_space<vmem>>, vector<4x16x32xf32>,
    return
  }
  func.func @transform_0(%arg0: i32) -> (i32, i32, i32) {
    %c0_i32 = arith.constant 0 : i32
    %c0_i32_0 = arith.constant 0 : i32
    %c0_i32_1 = arith.constant 0 : i32
    return %arg0, %c0_i32, %c0_i32_0 : i32, i32, i32
  }
  func.func @transform_1(%arg0: i32) -> (i32, i32) {
    %c0_i32 = arith.constant 0 : i32
    %c0_i32_0 = arith.constant 0 : i32
    %c0_i32_1 = arith.constant 0 : i32
    return %c0_i32, %c0_i32_0 : i32, i32
  }
  func.func @transform_2(%arg0: i32) -> (i32, i32) {
    %c0_i32 = arith.constant 0 : i32
    %c0_i32_0 = arith.constant 0 : i32
    %c0_i32_1 = arith.constant 0 : i32
    return %c0_i32, %c0_i32_0 : i32, i32
  }
  func.func @transform_3(%arg0: i32) -> (i32, i32) {
    %c0_i32 = arith.constant 0 : i32
    %c0_i32_0 = arith.constant 0 : i32
    %c0_i32_1 = arith.constant 0 : i32
    return %c0_i32, %c0_i32_0 : i32, i32
  }
  func.func @transform_4(%arg0: i32) -> (i32, i32, i32) {
    %c0_i32 = arith.constant 0 : i32
    %c0_i32_0 = arith.constant 0 : i32
    %c0_i32_1 = arith.constant 0 : i32
    return %arg0, %c0_i32, %c0_i32_0 : i32, i32, i32
  }
}

</mosaic_0001>

<bundles_post_ra>
// kernel: siglip_vision_embeddings_forward.1
= control target key start
LH: loop header
LB: loop body
LE: loop exit
PB: predicated region body
PF: predicated region fallthrough
CT: control target
= control target key end

     0   :  { %9 = vsyncpa [#allocation3], 0  ;;  %s813_s0 = inlined_call_operand.vmem [shape: f32[8,16,48], index: 0, kind: input, shape index: {}]   ;;  %s814_s1 = inlined_call_operand.vmem [shape: f32[48,32], index: 1, kind: input, shape index: {}]   ;;  %s815_s2 = inlined_call_operand.vmem [shape: f32[1,32], index: 2, kind: input, shape index: {}]   ;;  %s816_s3 = inlined_call_operand.vmem [shape: f32[16,32], index: 3, kind: input, shape index: {}]   ;;  %s817_s4 = inlined_call_operand.hbm [shape: f32[8,16,32], index: 4, kind: output, shape index: {}]  }
   0x1   :  { %11 = vsyncpa [#allocation3 + $0x1], 0  ;;  %s664_s15 = smov 0   ;;  %s666_s16 = smov 0  }
   0x2   :  { %s668_s17 = smov 0   ;;  %s670_s18 = smov 0  }
   0x3 LB: > { %s685_s19 = sadd.s32 4294967295, %s634_s18   ;;  %s449_s20 = sadd.s32 4294967294, %s634_s18   ;;  %s634_s18 = sphi %s670_s18, %s823_s18   ;;  %s630_s17 = sphi %s668_s17, %s822_s17   ;;  %s626_s16 = sphi %s666_s16, %s821_s16   ;;  %s622_s15 = sphi %s664_s15, %s820_s15  }
   0x4   : > { %s689_s21 = sadd.s32 1, %s634_s18   ;;  %s113_s22 = sadd.s32 1, %s630_s17 }
   0x5   : > { %s110_s23 = ssub.s32 %s634_s18, %s689_s21  ;;  %p123_p0 = scmp.ne.s32.totalorder %s630_s17, %s626_s16 }
   0x6   : > { %p111_p1 = scmp.eq.s32.totalorder %s110_s23, 0  ;;  %p124_p2 = scmp.eq.s32.totalorder %s685_s19, 1 }
   0x7   : > { %p129_p3 = scmp.ne.s32.totalorder %s626_s16, %s622_s15  ;;  %p130_p4 = scmp.eq.s32.totalorder %s449_s20, 1 }
   0x8   : > { %s700_s24 = scalar_select %p111_p1, %s630_s17, %s113_s22  }
   0x9   : > { %p702_p5 = por %p124_p2, %p123_p0  ;;  %p706_p6 = por %p130_p4, %p129_p3 }
   0xa   : > { %p452_p7 = scmp.ge.s32.totalorder %s634_s18, 1  ;;  %p167_p8 = scmp.lt.s32.totalorder %s634_s18, 3 }
   0xc   : > { %p168_p9 = pnand %p452_p7, %p167_p8 }
   0xd   : > { %v210_v0 = vld [vmem:[%s814_s1] sm:$0xff] (!%p168_p9)  ;;  %v211_v1 = vld [vmem:[%s814_s1 + $0x8] sm:$0xff] (!%p168_p9)  ;;  %v212_v2 = vld [vmem:[%s814_s1 + $0x10] sm:$0xff] (!%p168_p9)  ;;  %s454_s7 = sshll.u32 (!%p168_p9), %s685_s19, 2  ;;  %vm223_vm0 = vcmask (!%p168_p9), 392192   ;;  %s191_s27 = sand.u32 (!%p168_p9), 1, %s626_s16  }
   0xe   : > { %171 = sbr.rel (%p168_p9) target bundleno = 265 (0x109), region = 36  ;;  %v513_v3 = vpack.c.bf16 (!%p168_p9), %v211_v1, %v210_v0  ;;  %v213_v4 = vld [vmem:[%s814_s1 + $0x18] sm:$0xff] (!%p168_p9)  ;;  %p195_p10 = scmp.lt.s32.totalorder (!%p168_p9), %s454_s7, 7  ;;  %v214_v6 = vld [vmem:[%s814_s1 + $0x20] sm:$0xff] (!%p168_p9)  ;;  %v215_v7 = vld [vmem:[%s814_s1 + $0x28] sm:$0xff] (!%p168_p9)  ;;  %vm363_vm1 = vcmask (!%p168_p9), 261120  }
   0xf   : > { %v517_v5 = vpack.c.bf16 (!%p168_p9), %v213_v4, %v212_v2  ;;  %v521_v8 = vpack.c.bf16 (!%p168_p9), %v215_v7, %v214_v6  ;;  %v457_v17 = vld [vmem:[%s815_s2] ss:$0 sm:$0xff] (!%p168_p9)  ;;  %s453_s30 = sshll.u32 (!%p168_p9), %s191_s27, 6  ;;  %v354_v19 = vld [vmem:[%s816_s3 + $0x8] sm:$0xff] (!%p168_p9)  ;;  %s474_s9 = sshll.u32 (!%p168_p9), %s685_s19, 10 }
  0x10   : > { %514 = vmatprep.subr.bf16.mxu0 (!%p168_p9), %v513_v3  ;;  %525 = vmatprep.subr.bf16.mxu1 (!%p168_p9), %v513_v3  ;;  %v353_v24 = vld [vmem:[%s816_s3] sm:$0xff] (!%p168_p9)  ;;  %s193_s10 = scalar_lea.vmem (!%p168_p9), [#allocation2], %s453_s30  ;;  %s762_s13 = scalar_lea.hbm (!%p168_p9), %s817_s4, %s474_s9 }
  0x11   : > { %516 = vmatpush3.bf16.msra.mxu0 (!%p168_p9), %v513_v3  ;;  %528 = vmatpush3.bf16.msra.mxu1 (!%p168_p9), %v513_v3  ;;  %s387_s11 = sshll.u32 (!%p168_p9), %s193_s10, 4  ;;  %s636_s22 = smov (!%p168_p9), [#allocation2]   ;;  %s764_s11 = int_to_ptr.vmem [resolvable:$true] %s387_s11 }
  0x12   : > { %518 = vmatprep.subr.bf16.mxu0 (!%p168_p9), %v517_v5  ;;  %526 = vmatprep.subr.bf16.mxu1 (!%p168_p9), %v517_v5  ;;  %s572_s20 = scalar_lea.vmem (!%p168_p9), %s764_s11, 1024 }
  0x13   : > { %p573_p11 = scmp.ne.s32.totalorder (!%p168_p9), %s764_s11, %s572_s20 }
  0x15   : > { %s825_s7 = smov (!%p195_p10, %s454_s7), 7  ;;  %520 = vmatpush3.bf16.msra.mxu0 %v517_v5  ;;  %529 = vmatpush3.bf16.msra.mxu1 %v517_v5  ;;  %p574_p12 = pnand %p573_p11, %p702_p5 }
  0x16   : > { %s472_s14 = sshll.u32 %s825_s7, 4  ;;  %522 = vmatprep.subr.bf16.mxu0 %v521_v8  ;;  %527 = vmatprep.subr.bf16.mxu1 %v521_v8 }
  0x17   : > { %s199_s23 = scalar_lea.vmem %s813_s0, %s472_s14  ;;  %s772_s14 = scalar_lea.sflag [#allocation3], %s191_s27 }
  0x18   : > { %v202_v9 = vld [vmem:[%s199_s23] sm:$0xff]  ;;  %v203_v11 = vld [vmem:[%s199_s23 + $0x8] sm:$0xff]  ;;  %v204_v13 = vld [vmem:[%s199_s23 + $0x10] sm:$0xff]  ;;  %p575_p13 = pneg %p574_p12 }
  0x19   : > { %v206_v10 = vld [vmem:[%s199_s23 + $0x20] sm:$0xff]  ;;  %501 = vmatprep.mubr.msk.f32.mxu0 %vm223_vm0, %v202_v9  ;;  %524 = vmatpush3.bf16.msra.mxu0 %v521_v8  ;;  %v207_v12 = vld [vmem:[%s199_s23 + $0x28] sm:$0xff]  ;;  %v208_v14 = vld [vmem:[%s199_s23 + $0x30] sm:$0xff] }
  0x1a   : > { %507 = vmatprep.mubr.msk.f32.mxu1 %vm223_vm0, %v206_v10  ;;  %530 = vmatpush3.bf16.msra.mxu1 %v521_v8  ;;  %v205_v15 = vld [vmem:[%s199_s23 + $0x18] sm:$0xff] }
  0x1b   : > { %v209_v16 = vld [vmem:[%s199_s23 + $0x38] sm:$0xff]  ;;  %s576_s23 = sshll.u32 %s636_s22, 4  ;;  %s577_s23 = int_to_ptr.vmem [resolvable:$false] %s576_s23 }
  0x1c   : > { %502 = vmatmul.mubr.msk.f32.vlgmr.msra.gmra.mrb[0].mxu0 %vm223_vm0, %v203_v11  ;;  %s578_s28 = scalar_lea.vmem %s577_s23, 2048  ;;  %p579_p0 = scmp.lt.s32.totalorder %s764_s11, %s577_s23 }
  0x1d   : > { %508 = vmatmul.mubr.msk.f32.vlgmr.msra.gmra.mrb[0].mxu1 %vm223_vm0, %v207_v12  ;;  %504 = vmatprep.mubr.msk.f32.mxu0 %vm223_vm0, %v204_v13  ;;  %p580_p1 = scmp.lt.s32.totalorder %s578_s28, %s572_s20 }
  0x1e   : > { %510 = vmatprep.mubr.msk.f32.mxu1 %vm223_vm0, %v208_v14 }
  0x1f   : > { %p581_p2 = por %p580_p1, %p579_p0 }
  0x20   : > { %505 = vmatmul.mubr.msk.f32.gmra.mrb[2].mxu0 %vm223_vm0, %v205_v15 }
  0x21   : > { %511 = vmatmul.mubr.msk.f32.gmra.mrb[2].mxu1 %vm223_vm0, %v209_v16  ;;  %p582_p3 = pnand %p581_p2, %p575_p13 }
  0xef   : > { %v503_v18 = vpop.f32.mrb[0].mxu0 }
  0xf0   : > { %v509_v20 = vpop.f32.mrb[0].mxu1  ;;  %v320_v21 = vadd.f32 %v503_v18, %v457_v17  ;;  %v314_v23 = vpop.f32.mrb[1].mxu0 }
  0xf1   : > { %v340_v22 = vadd.f32 %v509_v20, %v457_v17  ;;  %v334_v25 = vpop.f32.mrb[1].mxu1  ;;  %v315_v26 = vadd.f32 %v457_v17, %v314_v23 }
  0xf2   : > { %v335_v27 = vadd.f32 %v457_v17, %v334_v25  ;;  %v356_v28 = vadd.f32 %v354_v19, %v320_v21 }
  0xf3   : > { %v360_v29 = vadd.f32 %v354_v19, %v340_v22  ;;  %v355_v30 = vadd.f32 %v353_v24, %v315_v26  ;;  %v506_v32 = vpop.f32.mrb[2].mxu0 }
  0xf4   : > { %v359_v31 = vadd.f32 %v353_v24, %v335_v27  ;;  %v512_v33 = vpop.f32.mrb[2].mxu1  ;;  %365 = vst.msk [vmem:[%s193_s10 + $0x8] sm:$0xff] %vm363_vm1, %v356_v28  ;;  %v330_v34 = vadd.f32 %v506_v32, %v457_v17  ;;  %v324_v36 = vpop.f32.mrb[3].mxu0 }
  0xf5   : > { %369 = vst.msk [vmem:[%s193_s10 + $0x28] sm:$0xff] %vm363_vm1, %v360_v29  ;;  %v350_v35 = vadd.f32 %v512_v33, %v457_v17  ;;  %v344_v37 = vpop.f32.mrb[3].mxu1  ;;  %364 = vst.msk [vmem:[%s193_s10] sm:$0xff] %vm363_vm1, %v355_v30  ;;  %v325_v38 = vadd.f32 %v457_v17, %v324_v36 }
  0xf6   : > { %368 = vst.msk [vmem:[%s193_s10 + $0x20] sm:$0xff] %vm363_vm1, %v359_v31  ;;  %v345_v39 = vadd.f32 %v457_v17, %v344_v37  ;;  %v358_v40 = vadd.f32 %v354_v19, %v330_v34 }
  0xf7   : > { %v362_v41 = vadd.f32 %v354_v19, %v350_v35  ;;  %v357_v42 = vadd.f32 %v353_v24, %v325_v38 }
  0xf8   : > { %v361_v43 = vadd.f32 %v353_v24, %v345_v39  ;;  %367 = vst.msk [vmem:[%s193_s10 + $0x18] sm:$0xff] %vm363_vm1, %v358_v40 }
  0xf9   : > { %371 = vst.msk [vmem:[%s193_s10 + $0x38] sm:$0xff] %vm363_vm1, %v362_v41  ;;  %366 = vst.msk [vmem:[%s193_s10 + $0x10] sm:$0xff] %vm363_vm1, %v357_v42 }
  0xfa   : > { %370 = vst.msk [vmem:[%s193_s10 + $0x30] sm:$0xff] %vm363_vm1, %v361_v43 }
  0xfb   : > { %585 = shalt.err (!%p582_p3)
}
  0xfc   : > { %s586_s27 = scalar_lea.hbm %s762_s13, 1024  ;;  %s590_s5 = scalar_lea.hbm %s817_s4, 2048 }
  0xfd   : > { %p587_p4 = scmp.ne.s32.totalorder %s762_s13, %s586_s27  ;;  %p591_p9 = scmp.lt.u32.totalorder %s762_s13, %s817_s4 }
  0xfe   : > { %p592_p10 = scmp.lt.u32.totalorder %s590_s5, %s586_s27  ;;  %p594_p12 = scmp.lt.u32.totalorder %s586_s27, %s762_s13 }
  0xff   : > { %p588_p7 = pnand %p587_p4, %p702_p5 }
 0x100   : > { %p593_p11 = por %p592_p10, %p591_p9 }
 0x101   : > { %p589_p8 = pneg %p588_p7 }
 0x102   : > { %p595_p13 = por %p594_p12, %p593_p11 }
 0x104   : > { %p596_p0 = pnand %p595_p13, %p589_p8 }
 0x106   : > { %599 = shalt.err (!%p596_p0)
}
 0x107   : > { %s637_s8 = smov 128   ;;  %s638_s9 = smov 8  }
 0x108   : > { %531 = dma.vmem_to_hbm [thread:$0]  (%p702_p5), %s764_s11, 1024, %s762_s13, %s772_s14, %s637_s8, %s637_s8, %s638_s9  }
 0x109 PF: > { %p537_p1 = scmp.ge.s32.totalorder %s634_s18, 2  ;;  %s402_s10 = sand.u32 1, %s622_s15  }
 0x10a   : > { %s403_s19 = scalar_lea.sflag [#allocation3], %s402_s10 }
 0x10b   : > { %p534_p2 = pnand %p537_p1, %p706_p6 }
 0x10d   : > { %617 = dma.done.wait (!%p534_p2), %s403_s19, 1024  }
 0x10e   : > { %619 = vsyncadd (!%p534_p2), %s403_s19, 4294966272  ;;  %p14_p3 = scmp.ge.s32.totalorder %s689_s21, 4   ;;  %s820_s15 = smov %s626_s16 }
 0x10f   : > { %s821_s16 = smov %s630_s17  ;;  %s822_s17 = smov %s700_s24 }
 0x110   : > { %s823_s18 = smov %s689_s21  ;;  %16 = sbr.rel (!%p14_p3) target bundleno = 3 (0x3), region = 71 }
 0x117   :  { %408 = vsyncpa [#allocation3], 1 }
 0x118   :  { %410 = vsyncpa [#allocation3 + $0x1], 1 }

</bundles_post_ra>
